<compile_context>
chip_gen: v6e
topology: v6e:2x2x1
jax: 0.10.0
libtpu: 0.0.40
codegen_flags: <defaults>
</compile_context>

<pallas_src>
import functools
import math

import jax
import jax.numpy as jnp
from jax.experimental import pallas as pl
from jax.experimental.pallas import tpu as pltpu

HIDDEN_DIM = 16  # hard-coded in multi_2Linear.__init__


def _round_up(x, m):
    return ((x + m - 1) // m) * m


def _lane_pack_factor(in_f, out_f, pack, weight_budget_bytes=2 * 1024 * 1024):
    """Rows-per-packed-row R making the hidden/output lane widths multiples of
    128.  Falls back to 1 (no packing) if the R-block-diagonal weights would
    not comfortably stay VMEM-resident (large in_f is already lane-dense)."""
    if not pack:
        return 1
    need = lambda d: 128 // math.gcd(128, d)
    r = math.lcm(need(HIDDEN_DIM), need(out_f))
    w_bytes = 4 * r * r * (in_f * HIDDEN_DIM + HIDDEN_DIM * out_f)
    if r == 1 or w_bytes > weight_budget_bytes:
        return 1
    return r


def _two_linear_kernel(x_ref, a_ref, b_ref, o_ref):
    # x_ref: (tmp, R*in_f)   packed input rows
    # a_ref: (R*in_f, R*H)   block-diagonal W1^T (VMEM-resident)
    # b_ref: (R*H, R*out_f)  block-diagonal W2^T (VMEM-resident)
    # o_ref: (tmp, R*out_f)  packed output rows
    h = jnp.dot(x_ref[...], a_ref[...], preferred_element_type=jnp.float32)
    h = jnp.maximum(h, 0.0)                      # ReLU on the f32 accumulator
    o = jnp.dot(h, b_ref[...], preferred_element_type=jnp.float32)
    o_ref[...] = o.astype(o_ref.dtype)


@functools.partial(jax.jit, static_argnames=("tm", "pack"))
def two_linear_forward(x, w1, w2, *, tm=8192, pack=True):
    """Fused relu(x @ w1^T) @ w2^T via one Pallas kernel, tiled over rows.

    x : [N, in_f]; w1: [16, in_f]; w2: [out_f, 16]  (PyTorch nn.Linear layout).
    """
    n, in_f = x.shape
    hid, in_f_w = w1.shape
    out_f, hid_w = w2.shape
    assert in_f == in_f_w and hid == hid_w == HIDDEN_DIM

    r = _lane_pack_factor(in_f, out_f, pack)

    # Free lane-dense packing (row-major metadata reshape).  Only the <=r-1
    # remainder rows get zero-padded (zero rows -> zero outputs, sliced off).
    n_r = _round_up(n, r)
    xr = x if n_r == n else jnp.pad(x, ((0, n_r - n), (0, 0)))
    n_packed = n_r // r
    xp = xr.reshape(n_packed, r * in_f)

    # r-block-diagonal, pre-transposed weights: kron(I_r, W^T).  Tiny; stays
    # VMEM-resident across the whole grid (constant index_map).  r == 1
    # degenerates to plain W^T (unpacked fallback).
    a = jnp.kron(jnp.eye(r, dtype=w1.dtype), w1.T)    # (r*in_f, r*hid)
    b = jnp.kron(jnp.eye(r, dtype=w2.dtype), w2.T)    # (r*hid, r*out_f)

    # Packed-row tile size.
    tmp = _round_up(max(8, tm // r), 8)
    if n_packed <= 8:
        tmp = n_packed                     # one full (possibly sub-8) block
    else:
        # Keep >=2 grid steps so ("parallel",) can shard across both v7x TCs.
        tmp = min(tmp, max(8, _round_up(pl.cdiv(n_packed, 2), 8)))
        # VMEM-aware clamp: double-buffered x/out blocks stay well under the
        # v5e 16 MiB default scoped limit and v7x's 64 MiB physical VMEM.
        row_bytes = 4 * (max(r * in_f, 128) + max(r * out_f, 128))
        max_rows = max(8, ((8 * 1024 * 1024) // (2 * row_bytes)) // 8 * 8)
        tmp = min(tmp, max_rows)

    grid = (pl.cdiv(n_packed, tmp),)   # partial last block handled by masking

    out_p = pl.pallas_call(
        _two_linear_kernel,
        out_shape=jax.ShapeDtypeStruct((n_packed, r * out_f), x.dtype),
        grid_spec=pltpu.PrefetchScalarGridSpec(
            num_scalar_prefetch=0,
            grid=grid,
            in_specs=[
                pl.BlockSpec((tmp, r * in_f), lambda i: (i, 0)),
                pl.BlockSpec((r * in_f, r * hid), lambda i: (0, 0)),
                pl.BlockSpec((r * hid, r * out_f), lambda i: (0, 0)),
            ],
            out_specs=pl.BlockSpec((tmp, r * out_f), lambda i: (i, 0)),
        ),
        compiler_params=pltpu.CompilerParams(
            dimension_semantics=("parallel",),
            vmem_limit_bytes=32 * 1024 * 1024,
        ),
    )(xp, a, b)

    out = out_p.reshape(n_r, out_f)    # free metadata reshape back to rows
    if n_r != n:
        out = out[:n]
    return out


def init_multi_2linear_params(linear_list, key):
    """Per-name parameter dict mimicking nn.Linear(bias=False), PyTorch layout:
      hidden_layer[name].weight : [HIDDEN_DIM, in_features]
      output_layer[name].weight : [out_features, HIDDEN_DIM]
    uniform(-1/sqrt(fan_in), 1/sqrt(fan_in)), like PyTorch's default init."""
    params = {}
    for name, in_f, out_f in linear_list:
        key, k1, k2 = jax.random.split(key, 3)
        b1 = 1.0 / math.sqrt(in_f)
        b2 = 1.0 / math.sqrt(HIDDEN_DIM)
        w1 = jax.random.uniform(k1, (HIDDEN_DIM, in_f), jnp.float32, -b1, b1)
        w2 = jax.random.uniform(k2, (out_f, HIDDEN_DIM), jnp.float32, -b2, b2)
        params[name] = {"hidden": w1, "output": w2}
    return params


def multi_2linear_forward(params, name_linear, h, *, tm=8192, pack=True):
    """Equivalent of multi_2Linear.forward(name_linear, h)."""
    w1 = params[name_linear]["hidden"]
    w2 = params[name_linear]["output"]
    return two_linear_forward(h, w1, w2, tm=tm, pack=pack)


def _ref(params, name, x):
    w1 = params[name]["hidden"]
    w2 = params[name]["output"]
    return jnp.maximum(x @ w1.T, 0.0) @ w2.T


if __name__ == "__main__":
    # linear_list entries are (name, in_features, out_features), as in NSHE.
    linear_list = [("paper", 32, 24), ("author", 48, 24)]

    key = jax.random.PRNGKey(0)
    params = init_multi_2linear_params(linear_list, key)

    # Case 1: small "paper" batch; N % 16 == 0 -> packed path, no extra passes.
    key, kx = jax.random.split(key)
    x_paper = jax.random.normal(kx, (16, 32), jnp.float32)
    out_paper = jax.block_until_ready(
        multi_2linear_forward(params, "paper", x_paper))
    assert out_paper.shape == (16, 24)
    assert jnp.allclose(out_paper, _ref(params, "paper", x_paper),
                        atol=1e-5, rtol=1e-5)

    # Case 2: N not a multiple of 16 / tile -> remainder pad + masked partial
    # last block of the cdiv grid.
    key, kx = jax.random.split(key)
    x_author = jax.random.normal(kx, (300, 48), jnp.float32)
    out_author = jax.block_until_ready(
        multi_2linear_forward(params, "author", x_author))
    assert out_author.shape == (300, 24)
    assert jnp.allclose(out_author, _ref(params, "author", x_author),
                        atol=1e-5, rtol=1e-5)

    # Case 3: unpacked fallback path (used automatically when in_f is large
    # enough that block-diagonal weights would not stay VMEM-resident) --
    # cdiv grid, no padding at all.
    out_np = jax.block_until_ready(
        multi_2linear_forward(params, "paper", x_paper, pack=False))
    assert jnp.allclose(out_np, _ref(params, "paper", x_paper),
                        atol=1e-5, rtol=1e-5)

    print("KERNEL_OK")
</pallas_src>

<mosaic_0001>
module attributes {stable_mosaic.version = 11 : i64} {
  func.func @_two_linear_kernel(%arg0: i32, %arg1: memref<1x512xf32, #tpu.memory_space<vmem>>, %arg2: memref<512x256xf32, #tpu.memory_space<vmem>>, %arg3: memref<256x384xf32, #tpu.memory_space<vmem>>, %arg4: memref<1x384xf32, #tpu.memory_space<vmem>>) attributes {dimension_semantics = [#tpu.dimension_semantics<parallel>], iteration_bounds = array<i64: 1>, scalar_prefetch = 0 : i64, scratch_operands = 0 : i64, tpu.core_type = #tpu.core_type<tc>, window_params = [{transform_indices = @transform_0, window_bounds = array<i64: 1, 512>}, {pipeline_mode = #tpu.pipeline_mode<synchronous>, transform_indices = @transform_1, window_bounds = array<i64: 512, 256>}, {pipeline_mode = #tpu.pipeline_mode<synchronous>, transform_indices = @transform_2, window_bounds = array<i64: 256, 384>}, {transform_indices = @transform_3, window_bounds = array<i64: 1, 384>}]} {
    %c0 = arith.constant 0 : index
    %c0_0 = arith.constant 0 : index
    %0 = vector.load %arg1[%c0, %c0_0] : memref<1x512xf32, #tpu.memory_space<vmem>>, vector<1x512xf32>
    %c0_1 = arith.constant 0 : index
    %c0_2 = arith.constant 0 : index
    %1 = vector.load %arg2[%c0_1, %c0_2] : memref<512x256xf32, #tpu.memory_space<vmem>>, vector<512x256xf32>
    %cst = arith.constant dense<0.000000e+00> : vector<1x256xf32>
    %2 = tpu.matmul %0, %1, %cst {dimension_numbers = #tpu.dot_dimension_numbers<[1], [0], [0], [1], [0, 0, 1, 1], [], []>} : vector<1x512xf32>, vector<512x256xf32>, vector<1x256xf32> -> vector<1x256xf32>
    %cst_3 = arith.constant 0.000000e+00 : f32
    %3 = vector.broadcast %cst_3 : f32 to vector<1x256xf32>
    %4 = arith.maximumf %2, %3 : vector<1x256xf32>
    %c0_4 = arith.constant 0 : index
    %c0_5 = arith.constant 0 : index
    %5 = vector.load %arg3[%c0_4, %c0_5] : memref<256x384xf32, #tpu.memory_space<vmem>>, vector<256x384xf32>
    %cst_6 = arith.constant dense<0.000000e+00> : vector<1x384xf32>
    %6 = tpu.matmul %4, %5, %cst_6 {dimension_numbers = #tpu.dot_dimension_numbers<[1], [0], [0], [1], [0, 0, 1, 1], [], []>} : vector<1x256xf32>, vector<256x384xf32>, vector<1x384xf32> -> vector<1x384xf32>
    %c0_7 = arith.constant 0 : index
    %c0_8 = arith.constant 0 : index
    %7 = vector.load %arg4[%c0_7, %c0_8] : memref<1x384xf32, #tpu.memory_space<vmem>>, vector<1x384xf32>
    tpu.vector_store %arg4[%c0_7, %c0_8], %6 {strides = array<i32>} : memref<1x384xf32, #tpu.memory_space<vmem>>, vector<1x384xf32>,
    return
  }
  func.func @transform_0(%arg0: i32) -> (i32, i32) {
    %c0_i32 = arith.constant 0 : i32
    %c0_i32_0 = arith.constant 0 : i32
    return %arg0, %c0_i32 : i32, i32
  }
  func.func @transform_1(%arg0: i32) -> (i32, i32) {
    %c0_i32 = arith.constant 0 : i32
    %c0_i32_0 = arith.constant 0 : i32
    %c0_i32_1 = arith.constant 0 : i32
    return %c0_i32, %c0_i32_0 : i32, i32
  }
  func.func @transform_2(%arg0: i32) -> (i32, i32) {
    %c0_i32 = arith.constant 0 : i32
    %c0_i32_0 = arith.constant 0 : i32
    %c0_i32_1 = arith.constant 0 : i32
    return %c0_i32, %c0_i32_0 : i32, i32
  }
  func.func @transform_3(%arg0: i32) -> (i32, i32) {
    %c0_i32 = arith.constant 0 : i32
    %c0_i32_0 = arith.constant 0 : i32
    return %arg0, %c0_i32 : i32, i32
  }
}

</mosaic_0001>

<bundles_post_ra>
// kernel: two_linear_forward.1
= control target key start
LH: loop header
LB: loop body
LE: loop exit
PB: predicated region body
PF: predicated region fallthrough
CT: control target
= control target key end

     0   :  { %s1325_s1 = inlined_call_operand.vmem [shape: f32[512,256], index: 1, kind: input, shape index: {}]   ;;  %s1326_s0 = inlined_call_operand.vmem [shape: f32[1,512], index: 0, kind: input, shape index: {}]   ;;  %s1327_s2 = inlined_call_operand.vmem [shape: f32[256,384], index: 2, kind: input, shape index: {}]   ;;  %s1328_s3 = inlined_call_operand.vmem [shape: f32[1,384], index: 3, kind: output, shape index: {}]  }
   0x1   :  { %v46_v0 = vld [vmem:[%s1325_s1 + $0xf8] sm:$0xff]  ;;  %v45_v2 = vld [vmem:[%s1325_s1 + $0xf0] sm:$0xff]  ;;  %v44_v4 = vld [vmem:[%s1325_s1 + $0xe8] sm:$0xff] }
   0x2   :  { %v110_v1 = vld [vmem:[%s1325_s1 + $0x2f8] sm:$0xff]  ;;  %164 = vmatprep.subr.mxu0 %v46_v0  ;;  %v109_v3 = vld [vmem:[%s1325_s1 + $0x2f0] sm:$0xff]  ;;  %v108_v5 = vld [vmem:[%s1325_s1 + $0x2e8] sm:$0xff] }
   0x3   :  { %235 = vmatprep.subr.mxu1 %v110_v1  ;;  %165 = vmatpush1.msra.mxu0 %v45_v2  ;;  %v43_v6 = vld [vmem:[%s1325_s1 + $0xe0] sm:$0xff]  ;;  %v42_v8 = vld [vmem:[%s1325_s1 + $0xd8] sm:$0xff]  ;;  %v41_v10 = vld [vmem:[%s1325_s1 + $0xd0] sm:$0xff] }
   0x4   :  { %236 = vmatpush1.msra.mxu1 %v109_v3  ;;  %v107_v7 = vld [vmem:[%s1325_s1 + $0x2e0] sm:$0xff]  ;;  %166 = vmatprep.subr.mxu0 %v44_v4  ;;  %v106_v9 = vld [vmem:[%s1325_s1 + $0x2d8] sm:$0xff]  ;;  %v105_v11 = vld [vmem:[%s1325_s1 + $0x2d0] sm:$0xff] }
   0x5   :  { %237 = vmatprep.subr.mxu1 %v108_v5  ;;  %167 = vmatpush1.msra.mxu0 %v43_v6  ;;  %v40_v12 = vld [vmem:[%s1325_s1 + $0xc8] sm:$0xff]  ;;  %v39_v14 = vld [vmem:[%s1325_s1 + $0xc0] sm:$0xff]  ;;  %v38_v16 = vld [vmem:[%s1325_s1 + $0xb8] sm:$0xff] }
   0x6   :  { %238 = vmatpush1.msra.mxu1 %v107_v7  ;;  %v104_v13 = vld [vmem:[%s1325_s1 + $0x2c8] sm:$0xff]  ;;  %168 = vmatprep.subr.mxu0 %v42_v8  ;;  %v103_v15 = vld [vmem:[%s1325_s1 + $0x2c0] sm:$0xff]  ;;  %v102_v17 = vld [vmem:[%s1325_s1 + $0x2b8] sm:$0xff] }
   0x7   :  { %239 = vmatprep.subr.mxu1 %v106_v9  ;;  %169 = vmatpush1.msra.mxu0 %v41_v10  ;;  %v37_v18 = vld [vmem:[%s1325_s1 + $0xb0] sm:$0xff]  ;;  %v36_v20 = vld [vmem:[%s1325_s1 + $0xa8] sm:$0xff]  ;;  %v35_v22 = vld [vmem:[%s1325_s1 + $0xa0] sm:$0xff] }
   0x8   :  { %240 = vmatpush1.msra.mxu1 %v105_v11  ;;  %170 = vmatprep.subr.mxu0 %v40_v12  ;;  %v101_v19 = vld [vmem:[%s1325_s1 + $0x2b0] sm:$0xff]  ;;  %v100_v21 = vld [vmem:[%s1325_s1 + $0x2a8] sm:$0xff]  ;;  %v99_v23 = vld [vmem:[%s1325_s1 + $0x2a0] sm:$0xff] }
   0x9   :  { %241 = vmatprep.subr.mxu1 %v104_v13  ;;  %171 = vmatpush1.msra.mxu0 %v39_v14  ;;  %v34_v24 = vld [vmem:[%s1325_s1 + $0x98] sm:$0xff]  ;;  %v33_v26 = vld [vmem:[%s1325_s1 + $0x90] sm:$0xff]  ;;  %v32_v28 = vld [vmem:[%s1325_s1 + $0x88] sm:$0xff] }
   0xa   :  { %242 = vmatpush1.msra.mxu1 %v103_v15  ;;  %172 = vmatprep.subr.mxu0 %v38_v16  ;;  %v98_v25 = vld [vmem:[%s1325_s1 + $0x298] sm:$0xff]  ;;  %v97_v27 = vld [vmem:[%s1325_s1 + $0x290] sm:$0xff]  ;;  %v96_v29 = vld [vmem:[%s1325_s1 + $0x288] sm:$0xff] }
   0xb   :  { %243 = vmatprep.subr.mxu1 %v102_v17  ;;  %173 = vmatpush1.msra.mxu0 %v37_v18  ;;  %v31_v30 = vld [vmem:[%s1325_s1 + $0x80] sm:$0xff]  ;;  %v30_v32 = vld [vmem:[%s1325_s1 + $0x78] sm:$0xff]  ;;  %v29_v34 = vld [vmem:[%s1325_s1 + $0x70] sm:$0xff] }
   0xc   :  { %244 = vmatpush1.msra.mxu1 %v101_v19  ;;  %174 = vmatprep.subr.mxu0 %v36_v20  ;;  %v95_v31 = vld [vmem:[%s1325_s1 + $0x280] sm:$0xff]  ;;  %v94_v33 = vld [vmem:[%s1325_s1 + $0x278] sm:$0xff]  ;;  %v93_v35 = vld [vmem:[%s1325_s1 + $0x270] sm:$0xff] }
   0xd   :  { %245 = vmatprep.subr.mxu1 %v100_v21  ;;  %175 = vmatpush1.msra.mxu0 %v35_v22  ;;  %v28_v36 = vld [vmem:[%s1325_s1 + $0x68] sm:$0xff]  ;;  %v27_v38 = vld [vmem:[%s1325_s1 + $0x60] sm:$0xff]  ;;  %v26_v40 = vld [vmem:[%s1325_s1 + $0x58] sm:$0xff] }
   0xe   :  { %246 = vmatpush1.msra.mxu1 %v99_v23  ;;  %176 = vmatprep.subr.mxu0 %v34_v24  ;;  %v92_v37 = vld [vmem:[%s1325_s1 + $0x268] sm:$0xff]  ;;  %v91_v39 = vld [vmem:[%s1325_s1 + $0x260] sm:$0xff]  ;;  %v90_v41 = vld [vmem:[%s1325_s1 + $0x258] sm:$0xff] }
   0xf   :  { %247 = vmatprep.subr.mxu1 %v98_v25  ;;  %177 = vmatpush1.msra.mxu0 %v33_v26  ;;  %v25_v42 = vld [vmem:[%s1325_s1 + $0x50] sm:$0xff]  ;;  %v24_v44 = vld [vmem:[%s1325_s1 + $0x48] sm:$0xff]  ;;  %v23_v46 = vld [vmem:[%s1325_s1 + $0x40] sm:$0xff] }
  0x10   :  { %248 = vmatpush1.msra.mxu1 %v97_v27  ;;  %178 = vmatprep.subr.mxu0 %v32_v28  ;;  %v89_v43 = vld [vmem:[%s1325_s1 + $0x250] sm:$0xff]  ;;  %v88_v45 = vld [vmem:[%s1325_s1 + $0x248] sm:$0xff]  ;;  %v87_v47 = vld [vmem:[%s1325_s1 + $0x240] sm:$0xff] }
  0x11   :  { %249 = vmatprep.subr.mxu1 %v96_v29  ;;  %179 = vmatpush1.msra.mxu0 %v31_v30  ;;  %v22_v48 = vld [vmem:[%s1325_s1 + $0x38] sm:$0xff]  ;;  %v21_v50 = vld [vmem:[%s1325_s1 + $0x30] sm:$0xff]  ;;  %v20_v52 = vld [vmem:[%s1325_s1 + $0x28] sm:$0xff] }
  0x12   :  { %250 = vmatpush1.msra.mxu1 %v95_v31  ;;  %180 = vmatprep.subr.mxu0 %v30_v32  ;;  %v86_v49 = vld [vmem:[%s1325_s1 + $0x238] sm:$0xff]  ;;  %v85_v51 = vld [vmem:[%s1325_s1 + $0x230] sm:$0xff]  ;;  %v84_v53 = vld [vmem:[%s1325_s1 + $0x228] sm:$0xff] }
  0x13   :  { %251 = vmatprep.subr.mxu1 %v94_v33  ;;  %181 = vmatpush1.msra.mxu0 %v29_v34  ;;  %v19_v54 = vld [vmem:[%s1325_s1 + $0x20] sm:$0xff]  ;;  %v18_v56 = vld [vmem:[%s1325_s1 + $0x18] sm:$0xff]  ;;  %v17_v58 = vld [vmem:[%s1325_s1 + $0x10] sm:$0xff] }
  0x14   :  { %252 = vmatpush1.msra.mxu1 %v93_v35  ;;  %182 = vmatprep.subr.mxu0 %v28_v36  ;;  %v83_v55 = vld [vmem:[%s1325_s1 + $0x220] sm:$0xff]  ;;  %v82_v57 = vld [vmem:[%s1325_s1 + $0x218] sm:$0xff]  ;;  %v81_v59 = vld [vmem:[%s1325_s1 + $0x210] sm:$0xff] }
  0x15   :  { %253 = vmatprep.subr.mxu1 %v92_v37  ;;  %183 = vmatpush1.msra.mxu0 %v27_v38  ;;  %v16_v60 = vld [vmem:[%s1325_s1 + $0x8] sm:$0xff]  ;;  %v15_v62 = vld [vmem:[%s1325_s1] sm:$0xff]  ;;  %v78_v0 = vld [vmem:[%s1325_s1 + $0x1f8] sm:$0xff]  ;;  %v144_v38 = vlaneseq }
  0x16   :  { %254 = vmatpush1.msra.mxu1 %v91_v39  ;;  %184 = vmatprep.subr.mxu0 %v26_v40  ;;  %v80_v61 = vld [vmem:[%s1325_s1 + $0x208] sm:$0xff]  ;;  %v79_v63 = vld [vmem:[%s1325_s1 + $0x200] sm:$0xff]  ;;  %v142_v1 = vld [vmem:[%s1325_s1 + $0x3f8] sm:$0xff] }
  0x17   :  { %255 = vmatprep.subr.mxu1 %v90_v41  ;;  %185 = vmatpush1.msra.mxu0 %v25_v42  ;;  %v77_v2 = vld [vmem:[%s1325_s1 + $0x1f0] sm:$0xff]  ;;  %v76_v4 = vld [vmem:[%s1325_s1 + $0x1e8] sm:$0xff]  ;;  %v75_v6 = vld [vmem:[%s1325_s1 + $0x1e0] sm:$0xff]  ;;  %vm574_vm0 = vcmp.lt.s32.totalorder %v144_v38, 384 }
  0x18   :  { %256 = vmatpush1.msra.mxu1 %v89_v43  ;;  %186 = vmatprep.subr.mxu0 %v24_v44  ;;  %v141_v3 = vld [vmem:[%s1325_s1 + $0x3f0] sm:$0xff]  ;;  %v140_v5 = vld [vmem:[%s1325_s1 + $0x3e8] sm:$0xff]  ;;  %v139_v7 = vld [vmem:[%s1325_s1 + $0x3e0] sm:$0xff] }
  0x19   :  { %257 = vmatprep.subr.mxu1 %v88_v45  ;;  %187 = vmatpush1.msra.mxu0 %v23_v46  ;;  %v74_v8 = vld [vmem:[%s1325_s1 + $0x1d8] sm:$0xff]  ;;  %v73_v10 = vld [vmem:[%s1325_s1 + $0x1d0] sm:$0xff]  ;;  %v72_v12 = vld [vmem:[%s1325_s1 + $0x1c8] sm:$0xff] }
  0x1a   :  { %258 = vmatpush1.msra.mxu1 %v87_v47  ;;  %188 = vmatprep.subr.mxu0 %v22_v48  ;;  %v138_v9 = vld [vmem:[%s1325_s1 + $0x3d8] sm:$0xff]  ;;  %v137_v11 = vld [vmem:[%s1325_s1 + $0x3d0] sm:$0xff]  ;;  %v136_v13 = vld [vmem:[%s1325_s1 + $0x3c8] sm:$0xff]  ;;  %v969_v47 = vshrl.u32 %v144_v38, 7 }
  0x1b   :  { %259 = vmatprep.subr.mxu1 %v86_v49  ;;  %189 = vmatpush1.msra.mxu0 %v21_v50  ;;  %v71_v14 = vld [vmem:[%s1325_s1 + $0x1c0] sm:$0xff]  ;;  %v70_v16 = vld [vmem:[%s1325_s1 + $0x1b8] sm:$0xff]  ;;  %v69_v18 = vld [vmem:[%s1325_s1 + $0x1b0] sm:$0xff] }
  0x1c   :  { %260 = vmatpush1.msra.mxu1 %v85_v51  ;;  %190 = vmatprep.subr.mxu0 %v20_v52  ;;  %v135_v15 = vld [vmem:[%s1325_s1 + $0x3c0] sm:$0xff]  ;;  %v134_v17 = vld [vmem:[%s1325_s1 + $0x3b8] sm:$0xff]  ;;  %v133_v19 = vld [vmem:[%s1325_s1 + $0x3b0] sm:$0xff] }
  0x1d   :  { %261 = vmatprep.subr.mxu1 %v84_v53  ;;  %191 = vmatpush1.msra.mxu0 %v19_v54  ;;  %v68_v20 = vld [vmem:[%s1325_s1 + $0x1a8] sm:$0xff]  ;;  %v67_v22 = vld [vmem:[%s1325_s1 + $0x1a0] sm:$0xff]  ;;  %v66_v24 = vld [vmem:[%s1325_s1 + $0x198] sm:$0xff] }
  0x1e   :  { %262 = vmatpush1.msra.mxu1 %v83_v55  ;;  %192 = vmatprep.subr.mxu0 %v18_v56  ;;  %v132_v21 = vld [vmem:[%s1325_s1 + $0x3a8] sm:$0xff]  ;;  %v131_v23 = vld [vmem:[%s1325_s1 + $0x3a0] sm:$0xff]  ;;  %v130_v25 = vld [vmem:[%s1325_s1 + $0x398] sm:$0xff]  ;;  %v150_v56 = vsub.s32 1, %v969_v47 }
  0x1f   :  { %263 = vmatprep.subr.mxu1 %v82_v57  ;;  %193 = vmatpush1.msra.mxu0 %v17_v58  ;;  %v65_v26 = vld [vmem:[%s1325_s1 + $0x190] sm:$0xff]  ;;  %v64_v28 = vld [vmem:[%s1325_s1 + $0x188] sm:$0xff]  ;;  %v63_v30 = vld [vmem:[%s1325_s1 + $0x180] sm:$0xff] }
  0x20   :  { %264 = vmatpush1.msra.mxu1 %v81_v59  ;;  %194 = vmatprep.subr.mxu0 %v16_v60  ;;  %v129_v27 = vld [vmem:[%s1325_s1 + $0x390] sm:$0xff]  ;;  %v128_v29 = vld [vmem:[%s1325_s1 + $0x388] sm:$0xff]  ;;  %v127_v31 = vld [vmem:[%s1325_s1 + $0x380] sm:$0xff]  ;;  %v158_v60 = vsub.s32 3, %v969_v47 }
  0x21   :  { %265 = vmatprep.subr.mxu1 %v80_v61  ;;  %195 = vmatpush1.msra.mxu0 %v15_v62  ;;  %v62_v32 = vld [vmem:[%s1325_s1 + $0x178] sm:$0xff]  ;;  %v61_v34 = vld [vmem:[%s1325_s1 + $0x170] sm:$0xff]  ;;  %v60_v36 = vld [vmem:[%s1325_s1 + $0x168] sm:$0xff] }
  0x22   :  { %266 = vmatpush1.msra.mxu1 %v79_v63  ;;  %196 = vmatprep.subr.mxu0 %v78_v0  ;;  %v126_v33 = vld [vmem:[%s1325_s1 + $0x378] sm:$0xff]  ;;  %v125_v35 = vld [vmem:[%s1325_s1 + $0x370] sm:$0xff]  ;;  %v124_v37 = vld [vmem:[%s1325_s1 + $0x368] sm:$0xff]  ;;  %v146_v63 = vsub.s32 0, %v969_v47  ;;  %v154_v0 = vsub.s32 2, %v969_v47 }
  0x23   :  { %267 = vmatprep.subr.mxu1 %v142_v1  ;;  %197 = vmatpush2.msra.mxu0 %v77_v2  ;;  %v59_v39 = vld [vmem:[%s1325_s1 + $0x160] sm:$0xff]  ;;  %v58_v41 = vld [vmem:[%s1325_s1 + $0x158] sm:$0xff]  ;;  %v57_v43 = vld [vmem:[%s1325_s1 + $0x150] sm:$0xff] }
  0x24   :  { %268 = vmatpush2.msra.mxu1 %v141_v3  ;;  %198 = vmatprep.subr.mxu0 %v76_v4  ;;  %v123_v40 = vld [vmem:[%s1325_s1 + $0x360] sm:$0xff]  ;;  %v122_v42 = vld [vmem:[%s1325_s1 + $0x358] sm:$0xff]  ;;  %v121_v44 = vld [vmem:[%s1325_s1 + $0x350] sm:$0xff] }
  0x25   :  { %269 = vmatprep.subr.mxu1 %v140_v5  ;;  %199 = vmatpush2.msra.mxu0 %v75_v6  ;;  %v56_v45 = vld [vmem:[%s1325_s1 + $0x148] sm:$0xff]  ;;  %v55_v48 = vld [vmem:[%s1325_s1 + $0x140] sm:$0xff]  ;;  %v54_v50 = vld [vmem:[%s1325_s1 + $0x138] sm:$0xff] }
  0x26   :  { %270 = vmatpush2.msra.mxu1 %v139_v7  ;;  %200 = vmatprep.subr.mxu0 %v74_v8  ;;  %v120_v46 = vld [vmem:[%s1325_s1 + $0x348] sm:$0xff]  ;;  %v119_v49 = vld [vmem:[%s1325_s1 + $0x340] sm:$0xff]  ;;  %v118_v51 = vld [vmem:[%s1325_s1 + $0x338] sm:$0xff] }
  0x27   :  { %271 = vmatprep.subr.mxu1 %v138_v9  ;;  %201 = vmatpush2.msra.mxu0 %v73_v10  ;;  %v53_v52 = vld [vmem:[%s1325_s1 + $0x130] sm:$0xff]  ;;  %v52_v54 = vld [vmem:[%s1325_s1 + $0x128] sm:$0xff]  ;;  %v51_v57 = vld [vmem:[%s1325_s1 + $0x120] sm:$0xff] }
  0x28   :  { %272 = vmatpush2.msra.mxu1 %v137_v11  ;;  %202 = vmatprep.subr.mxu0 %v72_v12  ;;  %v117_v53 = vld [vmem:[%s1325_s1 + $0x330] sm:$0xff]  ;;  %v116_v55 = vld [vmem:[%s1325_s1 + $0x328] sm:$0xff]  ;;  %v115_v58 = vld [vmem:[%s1325_s1 + $0x320] sm:$0xff] }
  0x29   :  { %273 = vmatprep.subr.mxu1 %v136_v13  ;;  %203 = vmatpush2.msra.mxu0 %v71_v14  ;;  %v14_v59 = vld [vmem:[%s1326_s0] sm:$0xf]  ;;  %v50_v61 = vld [vmem:[%s1325_s1 + $0x118] sm:$0xff]  ;;  %v49_v1 = vld [vmem:[%s1325_s1 + $0x110] sm:$0xff] }
  0x2a   :  { %274 = vmatpush2.msra.mxu1 %v135_v15  ;;  %204 = vmatprep.subr.mxu0 %v70_v16  ;;  %v114_v62 = vld [vmem:[%s1325_s1 + $0x318] sm:$0xff]  ;;  %v113_v2 = vld [vmem:[%s1325_s1 + $0x310] sm:$0xff]  ;;  %v48_v3 = vld [vmem:[%s1325_s1 + $0x108] sm:$0xff]  ;;  %v151_v5 = vrot.slane %v14_v59, %v150_v56  ;;  %v159_v7 = vrot.slane %v14_v59, %v158_v60  ;;  %v147_v9 = vrot.slane %v14_v59, %v146_v63 }
  0x2b   :  { %275 = vmatprep.subr.mxu1 %v134_v17  ;;  %205 = vmatpush2.msra.mxu0 %v69_v18  ;;  %v112_v4 = vld [vmem:[%s1325_s1 + $0x308] sm:$0xff]  ;;  %v47_v6 = vld [vmem:[%s1325_s1 + $0x100] sm:$0xff]  ;;  %v155_v10 = vrot.slane %v14_v59, %v154_v0  ;;  %v354_v11 = vld [vmem:[%s1327_s2 + $0x170] sm:$0xff] }
  0x2c   :  { %276 = vmatpush2.msra.mxu1 %v133_v19  ;;  %206 = vmatprep.subr.mxu0 %v68_v20  ;;  %v111_v8 = vld [vmem:[%s1325_s1 + $0x300] sm:$0xff]  ;;  %v403_v12 = vld [vmem:[%s1327_s2 + $0x2f8] sm:$0xff]  ;;  %v353_v13 = vld [vmem:[%s1327_s2 + $0x168] sm:$0xff] }
  0x2d   :  { %277 = vmatprep.subr.mxu1 %v132_v21  ;;  %207 = vmatpush2.msra.mxu0 %v67_v22  ;;  %v355_v14 = vld [vmem:[%s1327_s2 + $0x178] sm:$0xff]  ;;  %v400_v16 = vld [vmem:[%s1327_s2 + $0x2e0] sm:$0xff]  ;;  %v350_v17 = vld [vmem:[%s1327_s2 + $0x150] sm:$0xff] }
  0x2e   :  { %278 = vmatpush2.msra.mxu1 %v131_v23  ;;  %208 = vmatprep.subr.mxu0 %v66_v24  ;;  %v351_v15 = vld [vmem:[%s1327_s2 + $0x158] sm:$0xff]  ;;  %v352_v18 = vld [vmem:[%s1327_s2 + $0x160] sm:$0xff]  ;;  %v397_v20 = vld [vmem:[%s1327_s2 + $0x2c8] sm:$0xff] }
  0x2f   :  { %279 = vmatprep.subr.mxu1 %v130_v25  ;;  %209 = vmatpush2.msra.mxu0 %v65_v26  ;;  %v348_v19 = vld [vmem:[%s1327_s2 + $0x140] sm:$0xff]  ;;  %v347_v21 = vld [vmem:[%s1327_s2 + $0x138] sm:$0xff]  ;;  %v349_v22 = vld [vmem:[%s1327_s2 + $0x148] sm:$0xff] }
  0x30   :  { %280 = vmatpush2.msra.mxu1 %v129_v27  ;;  %210 = vmatprep.subr.mxu0 %v64_v28  ;;  %v345_v23 = vld [vmem:[%s1327_s2 + $0x128] sm:$0xff]  ;;  %v394_v24 = vld [vmem:[%s1327_s2 + $0x2b0] sm:$0xff]  ;;  %v344_v25 = vld [vmem:[%s1327_s2 + $0x120] sm:$0xff] }
  0x31   :  { %281 = vmatprep.subr.mxu1 %v128_v29  ;;  %211 = vmatpush2.msra.mxu0 %v63_v30  ;;  %v346_v26 = vld [vmem:[%s1327_s2 + $0x130] sm:$0xff]  ;;  %v391_v28 = vld [vmem:[%s1327_s2 + $0x298] sm:$0xff]  ;;  %v341_v29 = vld [vmem:[%s1327_s2 + $0x108] sm:$0xff] }
  0x32   :  { %282 = vmatpush2.msra.mxu1 %v127_v31  ;;  %212 = vmatprep.subr.mxu0 %v62_v32  ;;  %v342_v27 = vld [vmem:[%s1327_s2 + $0x110] sm:$0xff]  ;;  %v343_v30 = vld [vmem:[%s1327_s2 + $0x118] sm:$0xff]  ;;  %v388_v32 = vld [vmem:[%s1327_s2 + $0x280] sm:$0xff] }
  0x33   :  { %283 = vmatprep.subr.mxu1 %v126_v33  ;;  %213 = vmatpush2.msra.mxu0 %v61_v34  ;;  %v339_v31 = vld [vmem:[%s1327_s2 + $0xf8] sm:$0xff]  ;;  %v338_v33 = vld [vmem:[%s1327_s2 + $0xf0] sm:$0xff]  ;;  %v340_v34 = vld [vmem:[%s1327_s2 + $0x100] sm:$0xff] }
  0x34   :  { %284 = vmatpush2.msra.mxu1 %v125_v35  ;;  %214 = vmatprep.subr.mxu0 %v60_v36  ;;  %v336_v35 = vld [vmem:[%s1327_s2 + $0xe0] sm:$0xff]  ;;  %v385_v36 = vld [vmem:[%s1327_s2 + $0x268] sm:$0xff]  ;;  %v322_v60 = vld [vmem:[%s1327_s2 + $0x70] sm:$0xff] }
  0x35   :  { %285 = vmatprep.subr.mxu1 %v124_v37  ;;  %215 = vmatpush2.msra.mxu0 %v59_v39  ;;  %v335_v37 = vld [vmem:[%s1327_s2 + $0xd8] sm:$0xff]  ;;  %v337_v39 = vld [vmem:[%s1327_s2 + $0xe8] sm:$0xff]  ;;  %v320_v59 = vld [vmem:[%s1327_s2 + $0x60] sm:$0xff] }
  0x36   :  { %286 = vmatpush2.msra.mxu1 %v123_v40  ;;  %216 = vmatprep.subr.mxu0 %v58_v41  ;;  %v333_v40 = vld [vmem:[%s1327_s2 + $0xc8] sm:$0xff]  ;;  %v382_v41 = vld [vmem:[%s1327_s2 + $0x250] sm:$0xff]  ;;  %v315_v63 = vld [vmem:[%s1327_s2 + $0x38] sm:$0xff] }
  0x37   :  { %287 = vmatprep.subr.mxu1 %v122_v42  ;;  %217 = vmatpush2.msra.mxu0 %v57_v43  ;;  %v332_v42 = vld [vmem:[%s1327_s2 + $0xc0] sm:$0xff]  ;;  %v334_v43 = vld [vmem:[%s1327_s2 + $0xd0] sm:$0xff]  ;;  %v325_v56 = vld [vmem:[%s1327_s2 + $0x88] sm:$0xff] }
  0x38   :  { %288 = vmatpush2.msra.mxu1 %v121_v44  ;;  %218 = vmatprep.subr.mxu0 %v56_v45  ;;  %v330_v44 = vld [vmem:[%s1327_s2 + $0xb0] sm:$0xff]  ;;  %v379_v45 = vld [vmem:[%s1327_s2 + $0x238] sm:$0xff] }
  0x39   :  { %289 = vmatprep.subr.mxu1 %v120_v46  ;;  %219 = vmatpush2.msra.mxu0 %v55_v48  ;;  %v329_v46 = vld [vmem:[%s1327_s2 + $0xa8] sm:$0xff]  ;;  %v331_v48 = vld [vmem:[%s1327_s2 + $0xb8] sm:$0xff]  ;;  %v314_v0 = vld [vmem:[%s1327_s2 + $0x30] sm:$0xff] }
  0x3a   :  { %290 = vmatpush2.msra.mxu1 %v119_v49  ;;  %220 = vmatprep.subr.mxu0 %v54_v50  ;;  %v327_v49 = vld [vmem:[%s1327_s2 + $0x98] sm:$0xff]  ;;  %v376_v50 = vld [vmem:[%s1327_s2 + $0x220] sm:$0xff] }
  0x3b   :  { %291 = vmatprep.subr.mxu1 %v118_v51  ;;  %221 = vmatpush2.msra.mxu0 %v53_v52  ;;  %v326_v51 = vld [vmem:[%s1327_s2 + $0x90] sm:$0xff]  ;;  %v328_v52 = vld [vmem:[%s1327_s2 + $0xa0] sm:$0xff] }
  0x3c   :  { %292 = vmatpush2.msra.mxu1 %v117_v53  ;;  %222 = vmatprep.subr.mxu0 %v52_v54  ;;  %v324_v53 = vld [vmem:[%s1327_s2 + $0x80] sm:$0xff]  ;;  %v373_v54 = vld [vmem:[%s1327_s2 + $0x208] sm:$0xff] }
  0x3d   :  { %293 = vmatprep.subr.mxu1 %v116_v55  ;;  %223 = vmatpush2.msra.mxu0 %v51_v57  ;;  %v323_v55 = vld [vmem:[%s1327_s2 + $0x78] sm:$0xff]  ;;  %v321_v57 = vld [vmem:[%s1327_s2 + $0x68] sm:$0xff] }
  0x3e   :  { %294 = vmatpush2.msra.mxu1 %v115_v58  ;;  %224 = vmatprep.subr.mxu0 %v50_v61  ;;  %v370_v58 = vld [vmem:[%s1327_s2 + $0x1f0] sm:$0xff] }
  0x3f   :  { %295 = vmatprep.subr.mxu1 %v114_v62  ;;  %225 = vmatpush2.msra.mxu0 %v49_v1  ;;  %v318_v61 = vld [vmem:[%s1327_s2 + $0x50] sm:$0xff]  ;;  %v317_v62 = vld [vmem:[%s1327_s2 + $0x48] sm:$0xff]  ;;  %v312_v1 = vld [vmem:[%s1327_s2 + $0x20] sm:$0xff] }
  0x40   :  { %296 = vmatpush2.msra.mxu1 %v113_v2  ;;  %226 = vmatprep.subr.mxu0 %v48_v3  ;;  %v311_v2 = vld [vmem:[%s1327_s2 + $0x18] sm:$0xff]  ;;  %v309_v3 = vld [vmem:[%s1327_s2 + $0x8] sm:$0xff] }
  0x41   :  { %297 = vmatprep.subr.mxu1 %v112_v4  ;;  %227 = vmatpush2.msra.mxu0 %v47_v6  ;;  %v308_v4 = vld [vmem:[%s1327_s2] sm:$0xff]  ;;  %v401_v6 = vld [vmem:[%s1327_s2 + $0x2e8] sm:$0xff] }
  0x42   :  { %228 = vmatprep.mubr.f32.mxu0 %v151_v5  ;;  %298 = vmatpush2.msra.mxu1 %v111_v8  ;;  %v402_v5 = vld [vmem:[%s1327_s2 + $0x2f0] sm:$0xff] }
  0x43   :  { %299 = vmatprep.mubr.f32.mxu1 %v159_v7  ;;  %229 = vmatmul.mubr.f32.vlgmr.msra.gmra.mxu0 %v147_v9  ;;  %v399_v7 = vld [vmem:[%s1327_s2 + $0x2d8] sm:$0xff]  ;;  %v398_v8 = vld [vmem:[%s1327_s2 + $0x2d0] sm:$0xff]  ;;  %v396_v9 = vld [vmem:[%s1327_s2 + $0x2c0] sm:$0xff] }
  0x44   :  { %300 = vmatmul.mubr.f32.vlgmr.msra.gmra.mxu1 %v155_v10  ;;  %404 = vmatprep.subr.mxu0 %v354_v11  ;;  %v395_v10 = vld [vmem:[%s1327_s2 + $0x2b8] sm:$0xff]  ;;  %v393_v11 = vld [vmem:[%s1327_s2 + $0x2a8] sm:$0xff] }
  0x45   :  { %581 = vmatprep.subr.mxu1 %v403_v12  ;;  %405 = vmatpush1.msra.mxu0 %v353_v13  ;;  %v392_v12 = vld [vmem:[%s1327_s2 + $0x2a0] sm:$0xff]  ;;  %v390_v13 = vld [vmem:[%s1327_s2 + $0x290] sm:$0xff] }
  0x46   :  { %582 = vmatpush3.msra.mxu1 %v355_v14  ;;  %406 = vmatprep.subr.mxu0 %v351_v15  ;;  %v389_v14 = vld [vmem:[%s1327_s2 + $0x288] sm:$0xff]  ;;  %v387_v15 = vld [vmem:[%s1327_s2 + $0x278] sm:$0xff] }
  0x47   :  { %583 = vmatprep.subr.mxu1 %v400_v16  ;;  %407 = vmatpush1.msra.mxu0 %v350_v17  ;;  %v386_v16 = vld [vmem:[%s1327_s2 + $0x270] sm:$0xff]  ;;  %v384_v17 = vld [vmem:[%s1327_s2 + $0x260] sm:$0xff] }
  0x48   :  { %584 = vmatpush3.msra.mxu1 %v352_v18  ;;  %408 = vmatprep.subr.mxu0 %v348_v19  ;;  %v383_v18 = vld [vmem:[%s1327_s2 + $0x258] sm:$0xff]  ;;  %v381_v19 = vld [vmem:[%s1327_s2 + $0x248] sm:$0xff] }
  0x49   :  { %585 = vmatprep.subr.mxu1 %v397_v20  ;;  %409 = vmatpush1.msra.mxu0 %v347_v21  ;;  %v380_v20 = vld [vmem:[%s1327_s2 + $0x240] sm:$0xff]  ;;  %v378_v21 = vld [vmem:[%s1327_s2 + $0x230] sm:$0xff] }
  0x4a   :  { %586 = vmatpush3.msra.mxu1 %v349_v22  ;;  %410 = vmatprep.subr.mxu0 %v345_v23  ;;  %v377_v22 = vld [vmem:[%s1327_s2 + $0x228] sm:$0xff]  ;;  %v375_v23 = vld [vmem:[%s1327_s2 + $0x218] sm:$0xff] }
  0x4b   :  { %587 = vmatprep.subr.mxu1 %v394_v24  ;;  %411 = vmatpush1.msra.mxu0 %v344_v25  ;;  %v374_v24 = vld [vmem:[%s1327_s2 + $0x210] sm:$0xff]  ;;  %v372_v25 = vld [vmem:[%s1327_s2 + $0x200] sm:$0xff] }
  0x4c   :  { %588 = vmatpush3.msra.mxu1 %v346_v26  ;;  %412 = vmatprep.subr.mxu0 %v342_v27  ;;  %v371_v26 = vld [vmem:[%s1327_s2 + $0x1f8] sm:$0xff]  ;;  %v369_v27 = vld [vmem:[%s1327_s2 + $0x1e8] sm:$0xff] }
  0x4d   :  { %589 = vmatprep.subr.mxu1 %v391_v28  ;;  %413 = vmatpush1.msra.mxu0 %v341_v29  ;;  %v368_v28 = vld [vmem:[%s1327_s2 + $0x1e0] sm:$0xff]  ;;  %v366_v29 = vld [vmem:[%s1327_s2 + $0x1d0] sm:$0xff] }
  0x4e   :  { %590 = vmatpush3.msra.mxu1 %v343_v30  ;;  %414 = vmatprep.subr.mxu0 %v339_v31  ;;  %v367_v30 = vld [vmem:[%s1327_s2 + $0x1d8] sm:$0xff]  ;;  %v365_v31 = vld [vmem:[%s1327_s2 + $0x1c8] sm:$0xff] }
  0x4f   :  { %591 = vmatprep.subr.mxu1 %v388_v32  ;;  %415 = vmatpush1.msra.mxu0 %v338_v33  ;;  %v319_v32 = vld [vmem:[%s1327_s2 + $0x58] sm:$0xff] }
  0x50   :  { %592 = vmatpush3.msra.mxu1 %v340_v34  ;;  %416 = vmatprep.subr.mxu0 %v336_v35  ;;  %v363_v33 = vld [vmem:[%s1327_s2 + $0x1b8] sm:$0xff]  ;;  %v364_v34 = vld [vmem:[%s1327_s2 + $0x1c0] sm:$0xff]  ;;  %v362_v35 = vld [vmem:[%s1327_s2 + $0x1b0] sm:$0xff] }
  0x51   :  { %593 = vmatprep.subr.mxu1 %v385_v36  ;;  %417 = vmatpush1.msra.mxu0 %v335_v37  ;;  %v316_v36 = vld [vmem:[%s1327_s2 + $0x40] sm:$0xff] }
  0x52   :  { %594 = vmatpush3.msra.mxu1 %v337_v39  ;;  %418 = vmatprep.subr.mxu0 %v333_v40  ;;  %v360_v37 = vld [vmem:[%s1327_s2 + $0x1a0] sm:$0xff]  ;;  %v361_v39 = vld [vmem:[%s1327_s2 + $0x1a8] sm:$0xff]  ;;  %v359_v40 = vld [vmem:[%s1327_s2 + $0x198] sm:$0xff] }
  0x53   :  { %595 = vmatprep.subr.mxu1 %v382_v41  ;;  %419 = vmatpush1.msra.mxu0 %v332_v42  ;;  %v313_v41 = vld [vmem:[%s1327_s2 + $0x28] sm:$0xff] }
  0x54   :  { %596 = vmatpush3.msra.mxu1 %v334_v43  ;;  %420 = vmatprep.subr.mxu0 %v330_v44  ;;  %v357_v42 = vld [vmem:[%s1327_s2 + $0x188] sm:$0xff]  ;;  %v358_v43 = vld [vmem:[%s1327_s2 + $0x190] sm:$0xff]  ;;  %v356_v44 = vld [vmem:[%s1327_s2 + $0x180] sm:$0xff] }
  0x55   :  { %597 = vmatprep.subr.mxu1 %v379_v45  ;;  %421 = vmatpush1.msra.mxu0 %v329_v46  ;;  %v310_v45 = vld [vmem:[%s1327_s2 + $0x10] sm:$0xff] }
  0x56   :  { %598 = vmatpush3.msra.mxu1 %v331_v48  ;;  %422 = vmatprep.subr.mxu0 %v327_v49 }
  0x57   :  { %599 = vmatprep.subr.mxu1 %v376_v50  ;;  %423 = vmatpush1.msra.mxu0 %v326_v51 }
  0x58   :  { %600 = vmatpush3.msra.mxu1 %v328_v52  ;;  %424 = vmatprep.subr.mxu0 %v324_v53 }
  0x59   :  { %601 = vmatprep.subr.mxu1 %v373_v54  ;;  %425 = vmatpush1.msra.mxu0 %v323_v55  ;;  %v617_v55 = vmov 1966171168  }
  0x5a   :  { %602 = vmatpush3.msra.mxu1 %v325_v56  ;;  %426 = vmatprep.subr.mxu0 %v321_v57  ;;  %v550_v56 = vunpack.c.l.s4 %v617_v55 }
  0x5b   :  { %603 = vmatprep.subr.mxu1 %v370_v58  ;;  %427 = vmatpush1.msra.mxu0 %v320_v59 }
  0x5c   :  { %604 = vmatpush3.msra.mxu1 %v322_v60  ;;  %428 = vmatprep.subr.mxu0 %v318_v61  ;;  %v551_v57 = vunpack.c.0.s8 %v550_v56 }
  0x5d   :  { %429 = vmatpush1.msra.mxu0 %v317_v62  ;;  %605 = vmatprep.subr.mxu1 %v367_v30 }
  0x5e   :  { %430 = vmatprep.subr.mxu0 %v315_v63  ;;  %606 = vmatpush3.msra.mxu1 %v319_v32  ;;  %v554_v60 = vsub.s32 %v551_v57, %v969_v47 }
  0x5f   :  { %431 = vmatpush1.msra.mxu0 %v314_v0  ;;  %607 = vmatprep.subr.mxu1 %v364_v34 }
  0x60   :  { %432 = vmatprep.subr.mxu0 %v312_v1  ;;  %608 = vmatpush3.msra.mxu1 %v316_v36 }
  0x61   :  { %433 = vmatpush1.msra.mxu0 %v311_v2  ;;  %609 = vmatprep.subr.mxu1 %v361_v39 }
  0x62   :  { %434 = vmatprep.subr.mxu0 %v309_v3  ;;  %610 = vmatpush3.msra.mxu1 %v313_v41 }
  0x63   :  { %435 = vmatpush1.msra.mxu0 %v308_v4  ;;  %611 = vmatprep.subr.mxu1 %v358_v43 }
  0x64   :  { %436 = vmatprep.subr.mxu0 %v402_v5  ;;  %612 = vmatpush3.msra.mxu1 %v310_v45 }
  0x65   :  { %437 = vmatpush2.msra.mxu0 %v401_v6 }
  0x66   :  { %438 = vmatprep.subr.mxu0 %v399_v7 }
  0x67   :  { %439 = vmatpush2.msra.mxu0 %v398_v8 }
  0x68   :  { %440 = vmatprep.subr.mxu0 %v396_v9 }
  0x69   :  { %441 = vmatpush2.msra.mxu0 %v395_v10 }
  0x6a   :  { %442 = vmatprep.subr.mxu0 %v393_v11 }
  0x6b   :  { %443 = vmatpush2.msra.mxu0 %v392_v12 }
  0x6c   :  { %444 = vmatprep.subr.mxu0 %v390_v13 }
  0x6d   :  { %445 = vmatpush2.msra.mxu0 %v389_v14 }
  0x6e   :  { %446 = vmatprep.subr.mxu0 %v387_v15 }
  0x6f   :  { %447 = vmatpush2.msra.mxu0 %v386_v16 }
  0x70   :  { %448 = vmatprep.subr.mxu0 %v384_v17 }
  0x71   :  { %449 = vmatpush2.msra.mxu0 %v383_v18 }
  0x72   :  { %450 = vmatprep.subr.mxu0 %v381_v19 }
  0x73   :  { %451 = vmatpush2.msra.mxu0 %v380_v20 }
  0x74   :  { %452 = vmatprep.subr.mxu0 %v378_v21 }
  0x75   :  { %453 = vmatpush2.msra.mxu0 %v377_v22 }
  0x76   :  { %454 = vmatprep.subr.mxu0 %v375_v23 }
  0x77   :  { %455 = vmatpush2.msra.mxu0 %v374_v24 }
  0x78   :  { %456 = vmatprep.subr.mxu0 %v372_v25 }
  0x79   :  { %457 = vmatpush2.msra.mxu0 %v371_v26 }
  0x7a   :  { %458 = vmatprep.subr.mxu0 %v369_v27 }
  0x7b   :  { %459 = vmatpush2.msra.mxu0 %v368_v28 }
  0x7c   :  { %460 = vmatprep.subr.mxu0 %v366_v29 }
  0x7d   :  { %461 = vmatpush2.msra.mxu0 %v365_v31 }
  0x7e   :  { %462 = vmatprep.subr.mxu0 %v363_v33 }
  0x7f   :  { %463 = vmatpush2.msra.mxu0 %v362_v35 }
  0x80   :  { %464 = vmatprep.subr.mxu0 %v360_v37 }
  0x81   :  { %465 = vmatpush2.msra.mxu0 %v359_v40 }
  0x82   :  { %466 = vmatprep.subr.mxu0 %v357_v42 }
  0x83   :  { %467 = vmatpush2.msra.mxu0 %v356_v44 }
 0x103   :  { %v230_v46 = vpop.f32.mrf.mxu0 }
 0x104   :  { %v301_v48 = vpop.f32.mrf.mxu1 }
 0x105   :  { %v302_v49 = vadd.f32 %v301_v48, %v230_v46  ;;  %v232_v50 = vpop.f32.mrf.mxu0 }
 0x106   :  { %v303_v51 = vpop.f32.mrf.mxu1 }
 0x107   :  { %v304_v52 = vadd.f32 %v303_v51, %v232_v50  ;;  %v306_v54 = vmax.f32 %v302_v49, 0.0 }
 0x109   :  { %v307_v53 = vmax.f32 %v304_v52, 0.0 }
 0x10b   :  { %468 = vmatprep.mubr.f32.mxu0 %v307_v53  ;;  %539 = vmatprep.mubr.f32.mxu1 %v307_v53 }
 0x10c   :  { %469 = vmatmul.mubr.f32.vlgmr.msra.gmra.mxu0 %v306_v54  ;;  %540 = vmatmul.mubr.f32.vlgmr.msra.gmra.mxu1 %v306_v54 }
 0x1cc   :  { %v470_v58 = vpop.f32.mrf.mxu0  ;;  %v613_v59 = vpop.f32.mrf.mxu1 }
 0x1ce   :  { %v472_v61 = vpop.f32.mrf.mxu0  ;;  %v614_v62 = vpop.f32.mrf.mxu1 }
 0x1cf   :  { %v548_v63 = vcombine.low %v470_v58, %v472_v61  ;;  %v615_v0 = vadd.f32 %v614_v62, %v613_v59 }
 0x1d1   :  { %v555_v1 = vrot.slane %v548_v63, %v554_v60  ;;  %v562_v2 = vrot.slane %v615_v0, %v554_v60 }
 0x1d3   :  { %v563_v3 = vcombine.low %v555_v1, %v562_v2 }
 0x1d5   :  { %v570_v4 = vrot.slane %v563_v3, %v554_v60 }
 0x1d7   :  { %576 = vst.msk [vmem:[%s1328_s3] sm:$0x7] %vm574_vm0, %v570_v4 }

</bundles_post_ra>
